<compile_context>
chip_gen: v7x
topology: tpu7x:2x2x1
jax: 0.10.0
libtpu: 0.0.40
codegen_flags: <defaults>
</compile_context>

<pallas_src>
import jax
import jax.numpy as jnp
from jax.experimental import pallas as pl
from jax.experimental.pallas import tpu as pltpu


_VPU_K_MAX = 16  # contraction dims at/below this skip the MXU entirely


def _linear(x, w, b, *, use_vpu):
    """x:(B,K) @ w:(K,N) + b:(1,N), f32 accumulate."""
    if use_vpu:
        # K is tiny: unrolled broadcast FMAs on the VPU -> no MXU fill/drain for a
        # couple of useful MACs per lane.  Bias is folded into the first FMA.
        acc = b + x[:, 0:1] * w[0:1, :]
        for k in range(1, x.shape[1]):
            acc = acc + x[:, k:k + 1] * w[k:k + 1, :]
        return acc
    return jnp.dot(x, w, preferred_element_type=jnp.float32) + b


def blob_mlp_kernel(x_ref, w1_ref, b1_ref, w2_ref, b2_ref, w3_ref, b3_ref, o_ref):
    x = x_ref[...]

    # Layer 1: Linear + ReLU6
    h = _linear(x, w1_ref[...], b1_ref[...], use_vpu=x.shape[1] <= _VPU_K_MAX)
    h = jnp.clip(h, 0.0, 6.0)

    # Layer 2: Linear + ReLU6
    h = _linear(h, w2_ref[...], b2_ref[...], use_vpu=h.shape[1] <= _VPU_K_MAX)
    h = jnp.clip(h, 0.0, 6.0)

    # Layer 3: Linear (logits)
    out = _linear(h, w3_ref[...], b3_ref[...], use_vpu=h.shape[1] <= _VPU_K_MAX)
    o_ref[...] = out.astype(o_ref.dtype)


def blob_model_forward(x, params, *, max_batch_tile=512):
    """x: (B, input_features) float32.  params: dict of w1,b1,w2,b2,w3,b3."""
    B, in_f = x.shape
    hid = params["w1"].shape[1]
    out_f = params["w3"].shape[1]

    def round_up(a, m):
        return ((a + m - 1) // m) * m

    # Largest batch tile under the cap; pad B so it divides evenly.
    #   - small B (e.g. 32): batch_tile = B (rounded to a sublane multiple) -> grid=(1,)
    #   - large B: 512-row tiles, batch axis "parallel" so megacore chips split the grid.
    batch_tile = min(max_batch_tile, round_up(B, 8))
    B_pad = round_up(B, batch_tile)
    if B_pad != B:
        x = jnp.pad(x, ((0, B_pad - B), (0, 0)))

    grid = (B_pad // batch_tile,)

    # Batch is tiled; the (tiny) weights/biases are fully resident each step.
    # (At real layer sizes: single-buffer these constant-index specs and re-check
    #  VMEM against v7x's 64 MiB.)
    in_specs = [
        pl.BlockSpec((batch_tile, in_f), lambda i: (i, 0)),   # x tile
        pl.BlockSpec((in_f, hid), lambda i: (0, 0)),          # w1
        pl.BlockSpec((1, hid), lambda i: (0, 0)),             # b1
        pl.BlockSpec((hid, hid), lambda i: (0, 0)),           # w2
        pl.BlockSpec((1, hid), lambda i: (0, 0)),             # b2
        pl.BlockSpec((hid, out_f), lambda i: (0, 0)),         # w3
        pl.BlockSpec((1, out_f), lambda i: (0, 0)),           # b3
    ]
    out_spec = pl.BlockSpec((batch_tile, out_f), lambda i: (i, 0))

    out = pl.pallas_call(
        blob_mlp_kernel,
        out_shape=jax.ShapeDtypeStruct((B_pad, out_f), jnp.float32),
        grid_spec=pltpu.PrefetchScalarGridSpec(
            num_scalar_prefetch=0,
            grid=grid,
            in_specs=in_specs,
            out_specs=out_spec,
        ),
        compiler_params=pltpu.CompilerParams(
            dimension_semantics=("parallel",),
        ),
    )(x, params["w1"], params["b1"], params["w2"], params["b2"],
      params["w3"], params["b3"])

    return out[:B] if B_pad != B else out


def init_params(key, input_features, output_features, hidden_units=8):
    """Deterministic init mimicking nn.Linear's U(-1/sqrt(fan_in), 1/sqrt(fan_in))."""
    ks = jax.random.split(key, 6)

    def linear_init(kw, kb, fan_in, fan_out):
        bound = 1.0 / jnp.sqrt(jnp.float32(fan_in))
        w = jax.random.uniform(kw, (fan_in, fan_out), jnp.float32, -bound, bound)
        b = jax.random.uniform(kb, (1, fan_out), jnp.float32, -bound, bound)
        return w, b

    w1, b1 = linear_init(ks[0], ks[1], input_features, hidden_units)
    w2, b2 = linear_init(ks[2], ks[3], hidden_units, hidden_units)
    w3, b3 = linear_init(ks[4], ks[5], hidden_units, output_features)
    return {"w1": w1, "b1": b1, "w2": w2, "b2": b2, "w3": w3, "b3": b3}


def reference_forward(x, p):
    h = jnp.clip(x @ p["w1"] + p["b1"], 0.0, 6.0)
    h = jnp.clip(h @ p["w2"] + p["b2"], 0.0, 6.0)
    return h @ p["w3"] + p["b3"]


if __name__ == "__main__":
    key = jax.random.PRNGKey(0)
    k_param, k_x = jax.random.split(key)

    # Small shapes consistent with the module: 2 input features, 4 classes, 8 hidden.
    input_features, output_features, hidden_units = 2, 4, 8
    batch = 32

    params = init_params(k_param, input_features, output_features, hidden_units)
    x = jax.random.normal(k_x, (batch, input_features), jnp.float32)

    out = blob_model_forward(x, params)
    out = jax.block_until_ready(out)

    ref = reference_forward(x, params)
    assert out.shape == (batch, output_features)
    assert jnp.allclose(out, ref, atol=1e-5, rtol=1e-5)

    print("KERNEL_OK")
</pallas_src>

<mosaic_0001>
module attributes {stable_mosaic.version = 11 : i64} {
  func.func @blob_mlp_kernel(%arg0: i32, %arg1: memref<32x2xf32, #tpu.memory_space<vmem>>, %arg2: memref<2x8xf32, #tpu.memory_space<vmem>>, %arg3: memref<1x8xf32, #tpu.memory_space<vmem>>, %arg4: memref<8x8xf32, #tpu.memory_space<vmem>>, %arg5: memref<1x8xf32, #tpu.memory_space<vmem>>, %arg6: memref<8x4xf32, #tpu.memory_space<vmem>>, %arg7: memref<1x4xf32, #tpu.memory_space<vmem>>, %arg8: memref<32x4xf32, #tpu.memory_space<vmem>>) attributes {dimension_semantics = [#tpu.dimension_semantics<parallel>], iteration_bounds = array<i64: 1>, scalar_prefetch = 0 : i64, scratch_operands = 0 : i64, tpu.core_type = #tpu.core_type<tc>, window_params = [{transform_indices = @transform_0, window_bounds = array<i64: 32, 2>}, {pipeline_mode = #tpu.pipeline_mode<synchronous>, transform_indices = @transform_1, window_bounds = array<i64: 2, 8>}, {pipeline_mode = #tpu.pipeline_mode<synchronous>, transform_indices = @transform_2, window_bounds = array<i64: 1, 8>}, {pipeline_mode = #tpu.pipeline_mode<synchronous>, transform_indices = @transform_3, window_bounds = array<i64: 8, 8>}, {pipeline_mode = #tpu.pipeline_mode<synchronous>, transform_indices = @transform_4, window_bounds = array<i64: 1, 8>}, {pipeline_mode = #tpu.pipeline_mode<synchronous>, transform_indices = @transform_5, window_bounds = array<i64: 8, 4>}, {pipeline_mode = #tpu.pipeline_mode<synchronous>, transform_indices = @transform_6, window_bounds = array<i64: 1, 4>}, {transform_indices = @transform_7, window_bounds = array<i64: 32, 4>}]} {
    %c0 = arith.constant 0 : index
    %c0_0 = arith.constant 0 : index
    %0 = vector.load %arg1[%c0, %c0_0] : memref<32x2xf32, #tpu.memory_space<vmem>>, vector<32x2xf32>
    %c0_1 = arith.constant 0 : index
    %c0_2 = arith.constant 0 : index
    %1 = vector.load %arg2[%c0_1, %c0_2] : memref<2x8xf32, #tpu.memory_space<vmem>>, vector<2x8xf32>
    %c0_3 = arith.constant 0 : index
    %c0_4 = arith.constant 0 : index
    %2 = vector.load %arg3[%c0_3, %c0_4] : memref<1x8xf32, #tpu.memory_space<vmem>>, vector<1x8xf32>
    %3 = vector.extract_strided_slice %0 {offsets = [0, 0], sizes = [32, 1], strides = [1, 1]} : vector<32x2xf32> to vector<32x1xf32>
    %4 = vector.extract_strided_slice %1 {offsets = [0, 0], sizes = [1, 8], strides = [1, 1]} : vector<2x8xf32> to vector<1x8xf32>
    %5 = vector.broadcast %3 : vector<32x1xf32> to vector<32x8xf32>
    %6 = vector.broadcast %4 : vector<1x8xf32> to vector<32x8xf32>
    %7 = arith.mulf %5, %6 : vector<32x8xf32>
    %8 = vector.broadcast %2 : vector<1x8xf32> to vector<32x8xf32>
    %9 = arith.addf %8, %7 : vector<32x8xf32>
    %10 = vector.extract_strided_slice %0 {offsets = [0, 1], sizes = [32, 1], strides = [1, 1]} : vector<32x2xf32> to vector<32x1xf32>
    %11 = vector.extract_strided_slice %1 {offsets = [1, 0], sizes = [1, 8], strides = [1, 1]} : vector<2x8xf32> to vector<1x8xf32>
    %12 = vector.broadcast %10 : vector<32x1xf32> to vector<32x8xf32>
    %13 = vector.broadcast %11 : vector<1x8xf32> to vector<32x8xf32>
    %14 = arith.mulf %12, %13 : vector<32x8xf32>
    %15 = arith.addf %9, %14 : vector<32x8xf32>
    %cst = arith.constant 0.000000e+00 : f32
    %cst_5 = arith.constant 6.000000e+00 : f32
    %16 = vector.broadcast %cst : f32 to vector<32x8xf32>
    %17 = arith.maximumf %16, %15 : vector<32x8xf32>
    %18 = vector.broadcast %cst_5 : f32 to vector<32x8xf32>
    %19 = arith.minimumf %18, %17 : vector<32x8xf32>
    %c0_6 = arith.constant 0 : index
    %c0_7 = arith.constant 0 : index
    %20 = vector.load %arg4[%c0_6, %c0_7] : memref<8x8xf32, #tpu.memory_space<vmem>>, vector<8x8xf32>
    %c0_8 = arith.constant 0 : index
    %c0_9 = arith.constant 0 : index
    %21 = vector.load %arg5[%c0_8, %c0_9] : memref<1x8xf32, #tpu.memory_space<vmem>>, vector<1x8xf32>
    %22 = vector.extract_strided_slice %19 {offsets = [0, 0], sizes = [32, 1], strides = [1, 1]} : vector<32x8xf32> to vector<32x1xf32>
    %23 = vector.extract_strided_slice %20 {offsets = [0, 0], sizes = [1, 8], strides = [1, 1]} : vector<8x8xf32> to vector<1x8xf32>
    %24 = vector.broadcast %22 : vector<32x1xf32> to vector<32x8xf32>
    %25 = vector.broadcast %23 : vector<1x8xf32> to vector<32x8xf32>
    %26 = arith.mulf %24, %25 : vector<32x8xf32>
    %27 = vector.broadcast %21 : vector<1x8xf32> to vector<32x8xf32>
    %28 = arith.addf %27, %26 : vector<32x8xf32>
    %29 = vector.extract_strided_slice %19 {offsets = [0, 1], sizes = [32, 1], strides = [1, 1]} : vector<32x8xf32> to vector<32x1xf32>
    %30 = vector.extract_strided_slice %20 {offsets = [1, 0], sizes = [1, 8], strides = [1, 1]} : vector<8x8xf32> to vector<1x8xf32>
    %31 = vector.broadcast %29 : vector<32x1xf32> to vector<32x8xf32>
    %32 = vector.broadcast %30 : vector<1x8xf32> to vector<32x8xf32>
    %33 = arith.mulf %31, %32 : vector<32x8xf32>
    %34 = arith.addf %28, %33 : vector<32x8xf32>
    %35 = vector.extract_strided_slice %19 {offsets = [0, 2], sizes = [32, 1], strides = [1, 1]} : vector<32x8xf32> to vector<32x1xf32>
    %36 = vector.extract_strided_slice %20 {offsets = [2, 0], sizes = [1, 8], strides = [1, 1]} : vector<8x8xf32> to vector<1x8xf32>
    %37 = vector.broadcast %35 : vector<32x1xf32> to vector<32x8xf32>
    %38 = vector.broadcast %36 : vector<1x8xf32> to vector<32x8xf32>
    %39 = arith.mulf %37, %38 : vector<32x8xf32>
    %40 = arith.addf %34, %39 : vector<32x8xf32>
    %41 = vector.extract_strided_slice %19 {offsets = [0, 3], sizes = [32, 1], strides = [1, 1]} : vector<32x8xf32> to vector<32x1xf32>
    %42 = vector.extract_strided_slice %20 {offsets = [3, 0], sizes = [1, 8], strides = [1, 1]} : vector<8x8xf32> to vector<1x8xf32>
    %43 = vector.broadcast %41 : vector<32x1xf32> to vector<32x8xf32>
    %44 = vector.broadcast %42 : vector<1x8xf32> to vector<32x8xf32>
    %45 = arith.mulf %43, %44 : vector<32x8xf32>
    %46 = arith.addf %40, %45 : vector<32x8xf32>
    %47 = vector.extract_strided_slice %19 {offsets = [0, 4], sizes = [32, 1], strides = [1, 1]} : vector<32x8xf32> to vector<32x1xf32>
    %48 = vector.extract_strided_slice %20 {offsets = [4, 0], sizes = [1, 8], strides = [1, 1]} : vector<8x8xf32> to vector<1x8xf32>
    %49 = vector.broadcast %47 : vector<32x1xf32> to vector<32x8xf32>
    %50 = vector.broadcast %48 : vector<1x8xf32> to vector<32x8xf32>
    %51 = arith.mulf %49, %50 : vector<32x8xf32>
    %52 = arith.addf %46, %51 : vector<32x8xf32>
    %53 = vector.extract_strided_slice %19 {offsets = [0, 5], sizes = [32, 1], strides = [1, 1]} : vector<32x8xf32> to vector<32x1xf32>
    %54 = vector.extract_strided_slice %20 {offsets = [5, 0], sizes = [1, 8], strides = [1, 1]} : vector<8x8xf32> to vector<1x8xf32>
    %55 = vector.broadcast %53 : vector<32x1xf32> to vector<32x8xf32>
    %56 = vector.broadcast %54 : vector<1x8xf32> to vector<32x8xf32>
    %57 = arith.mulf %55, %56 : vector<32x8xf32>
    %58 = arith.addf %52, %57 : vector<32x8xf32>
    %59 = vector.extract_strided_slice %19 {offsets = [0, 6], sizes = [32, 1], strides = [1, 1]} : vector<32x8xf32> to vector<32x1xf32>
    %60 = vector.extract_strided_slice %20 {offsets = [6, 0], sizes = [1, 8], strides = [1, 1]} : vector<8x8xf32> to vector<1x8xf32>
    %61 = vector.broadcast %59 : vector<32x1xf32> to vector<32x8xf32>
    %62 = vector.broadcast %60 : vector<1x8xf32> to vector<32x8xf32>
    %63 = arith.mulf %61, %62 : vector<32x8xf32>
    %64 = arith.addf %58, %63 : vector<32x8xf32>
    %65 = vector.extract_strided_slice %19 {offsets = [0, 7], sizes = [32, 1], strides = [1, 1]} : vector<32x8xf32> to vector<32x1xf32>
    %66 = vector.extract_strided_slice %20 {offsets = [7, 0], sizes = [1, 8], strides = [1, 1]} : vector<8x8xf32> to vector<1x8xf32>
    %67 = vector.broadcast %65 : vector<32x1xf32> to vector<32x8xf32>
    %68 = vector.broadcast %66 : vector<1x8xf32> to vector<32x8xf32>
    %69 = arith.mulf %67, %68 : vector<32x8xf32>
    %70 = arith.addf %64, %69 : vector<32x8xf32>
    %cst_10 = arith.constant 0.000000e+00 : f32
    %cst_11 = arith.constant 6.000000e+00 : f32
    %71 = vector.broadcast %cst_10 : f32 to vector<32x8xf32>
    %72 = arith.maximumf %71, %70 : vector<32x8xf32>
    %73 = vector.broadcast %cst_11 : f32 to vector<32x8xf32>
    %74 = arith.minimumf %73, %72 : vector<32x8xf32>
    %c0_12 = arith.constant 0 : index
    %c0_13 = arith.constant 0 : index
    %75 = vector.load %arg6[%c0_12, %c0_13] : memref<8x4xf32, #tpu.memory_space<vmem>>, vector<8x4xf32>
    %c0_14 = arith.constant 0 : index
    %c0_15 = arith.constant 0 : index
    %76 = vector.load %arg7[%c0_14, %c0_15] : memref<1x4xf32, #tpu.memory_space<vmem>>, vector<1x4xf32>
    %77 = vector.extract_strided_slice %74 {offsets = [0, 0], sizes = [32, 1], strides = [1, 1]} : vector<32x8xf32> to vector<32x1xf32>
    %78 = vector.extract_strided_slice %75 {offsets = [0, 0], sizes = [1, 4], strides = [1, 1]} : vector<8x4xf32> to vector<1x4xf32>
    %79 = vector.broadcast %77 : vector<32x1xf32> to vector<32x4xf32>
    %80 = vector.broadcast %78 : vector<1x4xf32> to vector<32x4xf32>
    %81 = arith.mulf %79, %80 : vector<32x4xf32>
    %82 = vector.broadcast %76 : vector<1x4xf32> to vector<32x4xf32>
    %83 = arith.addf %82, %81 : vector<32x4xf32>
    %84 = vector.extract_strided_slice %74 {offsets = [0, 1], sizes = [32, 1], strides = [1, 1]} : vector<32x8xf32> to vector<32x1xf32>
    %85 = vector.extract_strided_slice %75 {offsets = [1, 0], sizes = [1, 4], strides = [1, 1]} : vector<8x4xf32> to vector<1x4xf32>
    %86 = vector.broadcast %84 : vector<32x1xf32> to vector<32x4xf32>
    %87 = vector.broadcast %85 : vector<1x4xf32> to vector<32x4xf32>
    %88 = arith.mulf %86, %87 : vector<32x4xf32>
    %89 = arith.addf %83, %88 : vector<32x4xf32>
    %90 = vector.extract_strided_slice %74 {offsets = [0, 2], sizes = [32, 1], strides = [1, 1]} : vector<32x8xf32> to vector<32x1xf32>
    %91 = vector.extract_strided_slice %75 {offsets = [2, 0], sizes = [1, 4], strides = [1, 1]} : vector<8x4xf32> to vector<1x4xf32>
    %92 = vector.broadcast %90 : vector<32x1xf32> to vector<32x4xf32>
    %93 = vector.broadcast %91 : vector<1x4xf32> to vector<32x4xf32>
    %94 = arith.mulf %92, %93 : vector<32x4xf32>
    %95 = arith.addf %89, %94 : vector<32x4xf32>
    %96 = vector.extract_strided_slice %74 {offsets = [0, 3], sizes = [32, 1], strides = [1, 1]} : vector<32x8xf32> to vector<32x1xf32>
    %97 = vector.extract_strided_slice %75 {offsets = [3, 0], sizes = [1, 4], strides = [1, 1]} : vector<8x4xf32> to vector<1x4xf32>
    %98 = vector.broadcast %96 : vector<32x1xf32> to vector<32x4xf32>
    %99 = vector.broadcast %97 : vector<1x4xf32> to vector<32x4xf32>
    %100 = arith.mulf %98, %99 : vector<32x4xf32>
    %101 = arith.addf %95, %100 : vector<32x4xf32>
    %102 = vector.extract_strided_slice %74 {offsets = [0, 4], sizes = [32, 1], strides = [1, 1]} : vector<32x8xf32> to vector<32x1xf32>
    %103 = vector.extract_strided_slice %75 {offsets = [4, 0], sizes = [1, 4], strides = [1, 1]} : vector<8x4xf32> to vector<1x4xf32>
    %104 = vector.broadcast %102 : vector<32x1xf32> to vector<32x4xf32>
    %105 = vector.broadcast %103 : vector<1x4xf32> to vector<32x4xf32>
    %106 = arith.mulf %104, %105 : vector<32x4xf32>
    %107 = arith.addf %101, %106 : vector<32x4xf32>
    %108 = vector.extract_strided_slice %74 {offsets = [0, 5], sizes = [32, 1], strides = [1, 1]} : vector<32x8xf32> to vector<32x1xf32>
    %109 = vector.extract_strided_slice %75 {offsets = [5, 0], sizes = [1, 4], strides = [1, 1]} : vector<8x4xf32> to vector<1x4xf32>
    %110 = vector.broadcast %108 : vector<32x1xf32> to vector<32x4xf32>
    %111 = vector.broadcast %109 : vector<1x4xf32> to vector<32x4xf32>
    %112 = arith.mulf %110, %111 : vector<32x4xf32>
    %113 = arith.addf %107, %112 : vector<32x4xf32>
    %114 = vector.extract_strided_slice %74 {offsets = [0, 6], sizes = [32, 1], strides = [1, 1]} : vector<32x8xf32> to vector<32x1xf32>
    %115 = vector.extract_strided_slice %75 {offsets = [6, 0], sizes = [1, 4], strides = [1, 1]} : vector<8x4xf32> to vector<1x4xf32>
    %116 = vector.broadcast %114 : vector<32x1xf32> to vector<32x4xf32>
    %117 = vector.broadcast %115 : vector<1x4xf32> to vector<32x4xf32>
    %118 = arith.mulf %116, %117 : vector<32x4xf32>
    %119 = arith.addf %113, %118 : vector<32x4xf32>
    %120 = vector.extract_strided_slice %74 {offsets = [0, 7], sizes = [32, 1], strides = [1, 1]} : vector<32x8xf32> to vector<32x1xf32>
    %121 = vector.extract_strided_slice %75 {offsets = [7, 0], sizes = [1, 4], strides = [1, 1]} : vector<8x4xf32> to vector<1x4xf32>
    %122 = vector.broadcast %120 : vector<32x1xf32> to vector<32x4xf32>
    %123 = vector.broadcast %121 : vector<1x4xf32> to vector<32x4xf32>
    %124 = arith.mulf %122, %123 : vector<32x4xf32>
    %125 = arith.addf %119, %124 : vector<32x4xf32>
    %c0_16 = arith.constant 0 : index
    %c0_17 = arith.constant 0 : index
    %126 = vector.load %arg8[%c0_16, %c0_17] : memref<32x4xf32, #tpu.memory_space<vmem>>, vector<32x4xf32>
    tpu.vector_store %arg8[%c0_16, %c0_17], %125 {strides = array<i32>} : memref<32x4xf32, #tpu.memory_space<vmem>>, vector<32x4xf32>,
    return
  }
  func.func @transform_0(%arg0: i32) -> (i32, i32) {
    %c0_i32 = arith.constant 0 : i32
    %c0_i32_0 = arith.constant 0 : i32
    return %arg0, %c0_i32 : i32, i32
  }
  func.func @transform_1(%arg0: i32) -> (i32, i32) {
    %c0_i32 = arith.constant 0 : i32
    %c0_i32_0 = arith.constant 0 : i32
    %c0_i32_1 = arith.constant 0 : i32
    return %c0_i32, %c0_i32_0 : i32, i32
  }
  func.func @transform_2(%arg0: i32) -> (i32, i32) {
    %c0_i32 = arith.constant 0 : i32
    %c0_i32_0 = arith.constant 0 : i32
    %c0_i32_1 = arith.constant 0 : i32
    return %c0_i32, %c0_i32_0 : i32, i32
  }
  func.func @transform_3(%arg0: i32) -> (i32, i32) {
    %c0_i32 = arith.constant 0 : i32
    %c0_i32_0 = arith.constant 0 : i32
    %c0_i32_1 = arith.constant 0 : i32
    return %c0_i32, %c0_i32_0 : i32, i32
  }
  func.func @transform_4(%arg0: i32) -> (i32, i32) {
    %c0_i32 = arith.constant 0 : i32
    %c0_i32_0 = arith.constant 0 : i32
    %c0_i32_1 = arith.constant 0 : i32
    return %c0_i32, %c0_i32_0 : i32, i32
  }
  func.func @transform_5(%arg0: i32) -> (i32, i32) {
    %c0_i32 = arith.constant 0 : i32
    %c0_i32_0 = arith.constant 0 : i32
    %c0_i32_1 = arith.constant 0 : i32
    return %c0_i32, %c0_i32_0 : i32, i32
  }
  func.func @transform_6(%arg0: i32) -> (i32, i32) {
    %c0_i32 = arith.constant 0 : i32
    %c0_i32_0 = arith.constant 0 : i32
    %c0_i32_1 = arith.constant 0 : i32
    return %c0_i32, %c0_i32_0 : i32, i32
  }
  func.func @transform_7(%arg0: i32) -> (i32, i32) {
    %c0_i32 = arith.constant 0 : i32
    %c0_i32_0 = arith.constant 0 : i32
    return %arg0, %c0_i32 : i32, i32
  }
}

</mosaic_0001>

<bundles_post_ra>
// kernel: tpu_custom_call.1
= control target key start
LH: loop header
LB: loop body
LE: loop exit
PB: predicated region body
PF: predicated region fallthrough
CT: control target
= control target key end

     0   :  { %v642_v0 = vmov 0   ;;  %v643_v5 = vmov 1   ;;  %v52_v6 = vlaneseq  ;;  %v644_v46 = vmov 2   ;;  %s862_s0 = inlined_call_operand.vmem [shape: f32[32,2], index: 0, kind: input, shape index: {}]   ;;  %s863_s1 = inlined_call_operand.vmem [shape: f32[2,8], index: 1, kind: input, shape index: {}]   ;;  %s864_s2 = inlined_call_operand.vmem [shape: f32[1,8], index: 2, kind: input, shape index: {}]   ;;  %s865_s3 = inlined_call_operand.vmem [shape: f32[8,8], index: 3, kind: input, shape index: {}]   ;;  %s866_s4 = inlined_call_operand.vmem [shape: f32[1,8], index: 4, kind: input, shape index: {}]   ;;  %s867_s5 = inlined_call_operand.vmem [shape: f32[8,4], index: 5, kind: input, shape index: {}]   ;;  %s868_s6 = inlined_call_operand.vmem [shape: f32[1,4], index: 6, kind: input, shape index: {}]   ;;  %s869_s7 = inlined_call_operand.vmem [shape: f32[32,4], index: 7, kind: output, shape index: {}]  }
   0x1   :  { %607 = vset.pattern.permute.xlu1 %v642_v0  ;;  %606 = vset.pattern.permute.xlu0 %v642_v0  ;;  %v28_v1 = vld [vmem:[%s862_s0 + $0x10] sm:$0xff]  ;;  %v26_v2 = vld [vmem:[%s862_s0] sm:$0xff]  ;;  %v29_v3 = vld [vmem:[%s862_s0 + $0x18] sm:$0xff]  ;;  %v645_v47 = vmov 3   ;;  %v646_v48 = vmov 4   ;;  %v647_v49 = vmov 5  }
   0x2   :  { %44 = vperm.xlu1 %607, %v28_v1   ;;  %34 = vperm.xlu0 %606, %v26_v2   ;;  %v27_v4 = vld [vmem:[%s862_s0 + $0x8] sm:$0xff]  ;;  %v708_v7 = vshrl.u32 %v52_v6, 7  ;;  %v30_v9 = vld [vmem:[%s863_s1] sm:$0x3]  ;;  %v648_v50 = vmov 6   ;;  %v649_v51 = vmov 7  }
   0x3   :  { %v595_v19 = vld [vmem:[%s864_s2] ss:$0 sm:$0xff]  ;;  %vm586_vm0 = vcmask 31744  }
   0x4   :  { %v711_v8 = vsub.s32 0, %v708_v7  ;;  %v718_v13 = vsub.s32 1, %v708_v7 }
   0x6   :  { %49 = vperm.xlu1 %607, %v29_v3   ;;  %39 = vperm.xlu0 %606, %v27_v4   ;;  %v55_v12 = vrot.slane %v30_v9, %v711_v8  ;;  %v89_v18 = vrot.slane %v30_v9, %v718_v13 }
   0xa   :  { %609 = vset.pattern.permute.xlu1 %v643_v5  ;;  %608 = vset.pattern.permute.xlu0 %v643_v5 }
   0xb   :  { %75 = vperm.xlu1 %609, %v27_v4   ;;  %71 = vperm.xlu0 %608, %v26_v2   ;;  %v106_v4 = vld [vmem:[%s865_s3] sm:$0xff] }
   0xf   :  { %79 = vperm.xlu1 %609, %v28_v1   ;;  %83 = vperm.xlu0 %608, %v29_v3  }
  0x13   :  { %610 = vset.pattern.permute.xlu1 %v642_v0  ;;  %611 = vset.pattern.permute.xlu0 %v642_v0 }
  0x81   :  { %v45_v10 = vpop.permute.xlu1 %44  ;;  %v35_v11 = vpop.permute.xlu0 %34 }
  0x82   :  { %v56_v16 = vmul.f32 %v55_v12, %v35_v11  ;;  %v58_v20 = vmul.f32 %v55_v12, %v45_v10  ;;  %v131_v10 = vrot.slane %v106_v4, %v711_v8  ;;  %v165_v11 = vrot.slane %v106_v4, %v718_v13 }
  0x84   :  { %v66_v24 = vadd.f32 %v595_v19, %v56_v16  ;;  %v68_v30 = vadd.f32 %v595_v19, %v58_v20  ;;  %v220_v20 = vsub.s32 3, %v708_v7 }
  0x85   :  { %v50_v14 = vpop.permute.xlu1 %49  ;;  %v40_v15 = vpop.permute.xlu0 %39 }
  0x86   :  { %v57_v17 = vmul.f32 %v55_v12, %v40_v15  ;;  %v59_v21 = vmul.f32 %v55_v12, %v50_v14  ;;  %v192_v12 = vsub.s32 2, %v708_v7 }
  0x88   :  { %v67_v25 = vadd.f32 %v595_v19, %v57_v17  ;;  %v69_v31 = vadd.f32 %v595_v19, %v59_v21  ;;  %v596_v17 = vld [vmem:[%s866_s4] ss:$0 sm:$0xff]  ;;  %v193_v19 = vrot.slane %v106_v4, %v192_v12 }
  0x8a   :  { %v76_v22 = vpop.permute.xlu1 %75  ;;  %v72_v23 = vpop.permute.xlu0 %71 }
  0x8b   :  { %v91_v26 = vmul.f32 %v89_v18, %v76_v22  ;;  %v90_v27 = vmul.f32 %v89_v18, %v72_v23 }
  0x8d   :  { %v95_v28 = vadd.f32 %v91_v26, %v67_v25  ;;  %v94_v29 = vadd.f32 %v90_v27, %v66_v24  ;;  %v248_v24 = vsub.s32 4, %v708_v7  ;;  %v221_v27 = vrot.slane %v106_v4, %v220_v20 }
  0x8e   :  { %v80_v32 = vpop.permute.xlu1 %79  ;;  %v84_v33 = vpop.permute.xlu0 %83 }
  0x8f   :  { %v99_v34 = vmax.f32 %v95_v28, 0.0  ;;  %v98_v35 = vmax.f32 %v94_v29, 0.0  ;;  %v92_v36 = vmul.f32 %v89_v18, %v80_v32  ;;  %v93_v37 = vmul.f32 %v89_v18, %v84_v33 }
  0x90   :  { %v249_v29 = vrot.slane %v106_v4, %v248_v24 }
  0x91   :  { %v103_v38 = vmin.f32 %v99_v34, 6.0  ;;  %v102_v39 = vmin.f32 %v98_v35, 6.0  ;;  %v96_v40 = vadd.f32 %v92_v36, %v68_v30  ;;  %v97_v41 = vadd.f32 %v93_v37, %v69_v31 }
  0x92   :  { %v276_v30 = vsub.s32 5, %v708_v7 }
  0x93   :  { %v100_v42 = vmax.f32 %v96_v40, 0.0  ;;  %115 = vperm.xlu0 %611, %v103_v38   ;;  %110 = vperm.xlu1 %610, %v102_v39   ;;  %v101_v44 = vmax.f32 %v97_v41, 0.0  ;;  %v332_v41 = vsub.s32 7, %v708_v7 }
  0x95   :  { %v104_v43 = vmin.f32 %v100_v42, 6.0  ;;  %v105_v45 = vmin.f32 %v101_v44, 6.0 }
  0x97   :  { %612 = vset.pattern.permute.xlu0 %v643_v5  ;;  %120 = vperm.xlu1 %610, %v104_v43  }
  0x98   :  { %147 = vperm.xlu0 %612, %v102_v39  }
  0x9b   :  { %125 = vperm.xlu1 %610, %v105_v45  }
  0x9c   :  { %159 = vperm.xlu0 %612, %v105_v45  }
  0x9f   :  { %613 = vset.pattern.permute.xlu1 %v643_v5 }
  0xa0   :  { %615 = vset.pattern.permute.xlu0 %v644_v46  ;;  %151 = vperm.xlu1 %613, %v103_v38  }
  0xa1   :  { %179 = vperm.xlu0 %615, %v103_v38  }
  0xa4   :  { %155 = vperm.xlu1 %613, %v104_v43  }
  0xa5   :  { %616 = vset.pattern.permute.xlu0 %v645_v47 }
  0xa6   :  { %203 = vperm.xlu0 %616, %v102_v39  }
  0xa8   :  { %614 = vset.pattern.permute.xlu1 %v644_v46 }
  0xa9   :  { %175 = vperm.xlu1 %614, %v102_v39  }
  0xaa   :  { %215 = vperm.xlu0 %616, %v105_v45  }
  0xad   :  { %183 = vperm.xlu1 %614, %v104_v43  }
  0xae   :  { %619 = vset.pattern.permute.xlu0 %v646_v48 }
  0xaf   :  { %235 = vperm.xlu0 %619, %v103_v38  }
  0xb1   :  { %187 = vperm.xlu1 %614, %v105_v45  }
  0xb3   :  { %620 = vset.pattern.permute.xlu0 %v647_v49 }
  0xb4   :  { %259 = vperm.xlu0 %620, %v102_v39  }
  0xb5   :  { %617 = vset.pattern.permute.xlu1 %v645_v47 }
  0xb6   :  { %207 = vperm.xlu1 %617, %v103_v38  }
  0xb8   :  { %271 = vperm.xlu0 %620, %v105_v45  }
  0xba   :  { %211 = vperm.xlu1 %617, %v104_v43  }
  0xbc   :  { %623 = vset.pattern.permute.xlu0 %v648_v50 }
  0xbd   :  { %291 = vperm.xlu0 %623, %v103_v38  }
  0xbe   :  { %618 = vset.pattern.permute.xlu1 %v646_v48 }
  0xbf   :  { %231 = vperm.xlu1 %618, %v102_v39  }
  0xc1   :  { %624 = vset.pattern.permute.xlu0 %v649_v51 }
  0xc2   :  { %315 = vperm.xlu0 %624, %v102_v39  }
  0xc3   :  { %239 = vperm.xlu1 %618, %v104_v43  }
  0xc6   :  { %327 = vperm.xlu0 %624, %v105_v45  }
  0xc7   :  { %243 = vperm.xlu1 %618, %v105_v45  }
  0xca   :  { %627 = vset.pattern.permute.xlu0 %v642_v0 }
  0xcb   :  { %621 = vset.pattern.permute.xlu1 %v647_v49 }
  0xcc   :  { %263 = vperm.xlu1 %621, %v103_v38  }
  0xd0   :  { %267 = vperm.xlu1 %621, %v104_v43  }
  0xd4   :  { %622 = vset.pattern.permute.xlu1 %v648_v50 }
  0xd5   :  { %287 = vperm.xlu1 %622, %v102_v39   ;;  %v304_v39 = vsub.s32 6, %v708_v7 }
  0xd9   :  { %295 = vperm.xlu1 %622, %v104_v43  }
  0xdd   :  { %299 = vperm.xlu1 %622, %v105_v45  }
  0xe1   :  { %625 = vset.pattern.permute.xlu1 %v649_v51 }
  0xe2   :  { %319 = vperm.xlu1 %625, %v103_v38   ;;  %v277_v38 = vrot.slane %v106_v4, %v276_v30 }
  0xe6   :  { %323 = vperm.xlu1 %625, %v104_v43  }
  0xea   :  { %626 = vset.pattern.permute.xlu1 %v642_v0 }
 0x112   :  { %v111_v52 = vpop.permute.xlu1 %110  ;;  %v116_v54 = vpop.permute.xlu0 %115 }
 0x113   :  { %v132_v16 = vmul.f32 %v131_v10, %v111_v52  ;;  %v133_v32 = vmul.f32 %v131_v10, %v116_v54 }
 0x115   :  { %v142_v22 = vadd.f32 %v596_v17, %v132_v16  ;;  %v143_v43 = vadd.f32 %v596_v17, %v133_v32 }
 0x116   :  { %v740_v53 = vpop.permute.xlu1 %120 }
 0x117   :  { %v148_v56 = vpop.permute.xlu0 %147 }
 0x118   :  { %v166_v18 = vmul.f32 %v165_v11, %v148_v56 }
 0x11a   :  { %v126_v55 = vpop.permute.xlu1 %125  ;;  %v170_v26 = vadd.f32 %v166_v18, %v142_v22  ;;  %v134_v22 = vmul.f32 %v131_v10, %v740_v53 }
 0x11b   :  { %v160_v59 = vpop.permute.xlu0 %159  ;;  %v135_v35 = vmul.f32 %v131_v10, %v126_v55  ;;  %v305_v55 = vrot.slane %v106_v4, %v304_v39 }
 0x11c   :  { %v169_v52 = vmul.f32 %v165_v11, %v160_v59 }
 0x11d   :  { %v145_v45 = vadd.f32 %v596_v17, %v135_v35 }
 0x11f   :  { %v152_v57 = vpop.permute.xlu1 %151 }
 0x120   :  { %v180_v61 = vpop.permute.xlu0 %179  ;;  %v167_v36 = vmul.f32 %v165_v11, %v152_v57  ;;  %v333_v57 = vrot.slane %v106_v4, %v332_v41 }
 0x121   :  { %v195_v54 = vmul.f32 %v193_v19, %v180_v61 }
 0x122   :  { %v171_v56 = vadd.f32 %v167_v36, %v143_v43  ;;  %v144_v36 = vadd.f32 %v596_v17, %v134_v22 }
 0x123   :  { %v742_v58 = vpop.permute.xlu1 %155 }
 0x124   :  { %v199_v32 = vadd.f32 %v195_v54, %v171_v56  ;;  %v168_v59 = vmul.f32 %v165_v11, %v742_v58 }
 0x125   :  { %v204_v63 = vpop.permute.xlu0 %203 }
 0x126   :  { %v222_v33 = vmul.f32 %v221_v27, %v204_v63  ;;  %v172_v43 = vadd.f32 %v168_v59, %v144_v36 }
 0x128   :  { %v176_v60 = vpop.permute.xlu1 %175 }
 0x129   :  { %v746_v3 = vpop.permute.xlu0 %215  ;;  %v194_v23 = vmul.f32 %v193_v19, %v176_v60 }
 0x12b   :  { %v198_v28 = vadd.f32 %v194_v23, %v170_v26 }
 0x12c   :  { %v744_v62 = vpop.permute.xlu1 %183 }
 0x12d   :  { %v226_v40 = vadd.f32 %v222_v33, %v198_v28  ;;  %v173_v28 = vadd.f32 %v169_v52, %v145_v45  ;;  %v196_v4 = vmul.f32 %v193_v19, %v744_v62 }
 0x12e   :  { %v753_v6 = vpop.permute.xlu0 %235 }
 0x12f   :  { %v200_v56 = vadd.f32 %v196_v4, %v172_v43 }
 0x130   :  { %v188_v1 = vpop.permute.xlu1 %187 }
 0x131   :  { %v197_v63 = vmul.f32 %v193_v19, %v188_v1 }
 0x133   :  { %v260_v14 = vpop.permute.xlu0 %259  ;;  %v201_v33 = vadd.f32 %v197_v63, %v173_v28 }
 0x134   :  { %v278_v60 = vmul.f32 %v277_v38, %v260_v14 }
 0x135   :  { %v208_v2 = vpop.permute.xlu1 %207 }
 0x137   :  { %v272_v25 = vpop.permute.xlu0 %271 }
 0x139   :  { %v748_v0 = vpop.permute.xlu1 %211 }
 0x13c   :  { %v292_v37 = vpop.permute.xlu0 %291 }
 0x13e   :  { %v232_v9 = vpop.permute.xlu1 %231 }
 0x13f   :  { %v250_v34 = vmul.f32 %v249_v29, %v232_v9  ;;  %v223_v9 = vmul.f32 %v221_v27, %v208_v2  ;;  %v225_v2 = vmul.f32 %v221_v27, %v746_v3  ;;  %v281_v3 = vmul.f32 %v277_v38, %v272_v25 }
 0x141   :  { %v254_v44 = vadd.f32 %v250_v34, %v226_v40  ;;  %v316_v16 = vpop.permute.xlu0 %315  ;;  %v227_v34 = vadd.f32 %v223_v9, %v199_v32  ;;  %v251_v40 = vmul.f32 %v249_v29, %v753_v6  ;;  %v229_v58 = vadd.f32 %v225_v2, %v201_v33 }
 0x142   :  { %v758_v15 = vpop.permute.xlu1 %239  ;;  %v334_v61 = vmul.f32 %v333_v57, %v316_v16  ;;  %v307_v6 = vmul.f32 %v305_v55, %v292_v37 }
 0x143   :  { %v282_v23 = vadd.f32 %v278_v60, %v254_v44  ;;  %v224_v44 = vmul.f32 %v221_v27, %v748_v0  ;;  %v255_v11 = vadd.f32 %v251_v40, %v227_v34  ;;  %v252_v54 = vmul.f32 %v249_v29, %v758_v15 }
 0x145   :  { %v228_v60 = vadd.f32 %v224_v44, %v200_v56  ;;  %v328_v22 = vpop.permute.xlu0 %327 }
 0x146   :  { %v244_v21 = vpop.permute.xlu1 %243  ;;  %v337_v28 = vmul.f32 %v333_v57, %v328_v22 }
 0x147   :  { %v253_v53 = vmul.f32 %v249_v29, %v244_v21  ;;  %v256_v63 = vadd.f32 %v252_v54, %v228_v60  ;;  %v597_v54 = vld [vmem:[%s868_s6] ss:$0 sm:$0xff] }
 0x149   :  { %v257_v62 = vadd.f32 %v253_v53, %v229_v58 }
 0x14b   :  { %v264_v31 = vpop.permute.xlu1 %263  ;;  %v285_v9 = vadd.f32 %v281_v3, %v257_v62 }
 0x14c   :  { %v279_v10 = vmul.f32 %v277_v38, %v264_v31 }
 0x14e   :  { %v283_v19 = vadd.f32 %v279_v10, %v255_v11  ;;  %v350_v10 = vld [vmem:[%s867_s5] sm:$0xff] }
 0x14f   :  { %v268_v42 = vpop.permute.xlu1 %267  ;;  %v409_v58 = vrot.slane %v350_v10, %v718_v13  ;;  %v437_v62 = vrot.slane %v350_v10, %v192_v12  ;;  %v465_v13 = vrot.slane %v350_v10, %v220_v20 }
 0x150   :  { %v280_v21 = vmul.f32 %v277_v38, %v268_v42  ;;  %v311_v16 = vadd.f32 %v307_v6, %v283_v19 }
 0x154   :  { %v288_v18 = vpop.permute.xlu1 %287 }
 0x155   :  { %v306_v26 = vmul.f32 %v305_v55, %v288_v18 }
 0x157   :  { %v310_v14 = vadd.f32 %v306_v26, %v282_v23  ;;  %v284_v23 = vadd.f32 %v280_v21, %v256_v63  ;;  %v493_v63 = vrot.slane %v350_v10, %v248_v24 }
 0x158   :  { %v296_v35 = vpop.permute.xlu1 %295 }
 0x159   :  { %v338_v1 = vadd.f32 %v334_v61, %v310_v14  ;;  %v308_v27 = vmul.f32 %v305_v55, %v296_v35 }
 0x15b   :  { %v342_v45 = vmax.f32 %v338_v1, 0.0  ;;  %v312_v32 = vadd.f32 %v308_v27, %v284_v23 }
 0x15c   :  { %v300_v52 = vpop.permute.xlu1 %299 }
 0x15d   :  { %v787_v17 = vmin.f32 %v342_v45, 6.0  ;;  %v309_v31 = vmul.f32 %v305_v55, %v300_v52  ;;  %v375_v45 = vrot.slane %v350_v10, %v711_v8 }
 0x15f   :  { %354 = vperm.xlu1 %626, %v787_v17   ;;  %v313_v15 = vadd.f32 %v309_v31, %v285_v9 }
 0x161   :  { %v320_v0 = vpop.permute.xlu1 %319  ;;  %v341_v14 = vadd.f32 %v337_v28, %v313_v15 }
 0x162   :  { %v335_v18 = vmul.f32 %v333_v57, %v320_v0 }
 0x163   :  { %v345_v42 = vmax.f32 %v341_v14, 0.0 }
 0x164   :  { %v339_v29 = vadd.f32 %v335_v18, %v311_v16 }
 0x165   :  { %v324_v26 = vpop.permute.xlu1 %323  ;;  %v349_v55 = vmin.f32 %v345_v42, 6.0 }
 0x166   :  { %v343_v59 = vmax.f32 %v339_v29, 0.0  ;;  %v336_v61 = vmul.f32 %v333_v57, %v324_v26  ;;  %v521_v29 = vrot.slane %v350_v10, %v276_v30 }
 0x168   :  { %v347_v25 = vmin.f32 %v343_v59, 6.0  ;;  %v340_v37 = vadd.f32 %v336_v61, %v312_v32 }
 0x16a   :  { %v344_v38 = vmax.f32 %v340_v37, 0.0  ;;  %359 = vperm.xlu0 %627, %v347_v25   ;;  %v549_v37 = vrot.slane %v350_v10, %v304_v39 }
 0x16c   :  { %v348_v33 = vmin.f32 %v344_v38, 6.0  ;;  %v577_v38 = vrot.slane %v350_v10, %v332_v41 }
 0x16e   :  { %628 = vset.pattern.permute.xlu0 %v643_v5  ;;  %364 = vperm.xlu1 %626, %v348_v33  }
 0x16f   :  { %391 = vperm.xlu0 %628, %v787_v17  }
 0x172   :  { %369 = vperm.xlu1 %626, %v349_v55  }
 0x173   :  { %403 = vperm.xlu0 %628, %v349_v55  }
 0x176   :  { %629 = vset.pattern.permute.xlu1 %v643_v5 }
 0x177   :  { %631 = vset.pattern.permute.xlu0 %v644_v46  ;;  %395 = vperm.xlu1 %629, %v347_v25  }
 0x178   :  { %423 = vperm.xlu0 %631, %v347_v25  }
 0x17b   :  { %399 = vperm.xlu1 %629, %v348_v33  }
 0x17c   :  { %632 = vset.pattern.permute.xlu0 %v645_v47 }
 0x17d   :  { %447 = vperm.xlu0 %632, %v787_v17  }
 0x17f   :  { %630 = vset.pattern.permute.xlu1 %v644_v46 }
 0x180   :  { %419 = vperm.xlu1 %630, %v787_v17  }
 0x181   :  { %459 = vperm.xlu0 %632, %v349_v55  }
 0x184   :  { %427 = vperm.xlu1 %630, %v348_v33  }
 0x185   :  { %635 = vset.pattern.permute.xlu0 %v646_v48 }
 0x186   :  { %479 = vperm.xlu0 %635, %v347_v25  }
 0x188   :  { %431 = vperm.xlu1 %630, %v349_v55  }
 0x18a   :  { %636 = vset.pattern.permute.xlu0 %v647_v49 }
 0x18b   :  { %503 = vperm.xlu0 %636, %v787_v17  }
 0x18c   :  { %633 = vset.pattern.permute.xlu1 %v645_v47 }
 0x18d   :  { %451 = vperm.xlu1 %633, %v347_v25  }
 0x18f   :  { %515 = vperm.xlu0 %636, %v349_v55  }
 0x191   :  { %455 = vperm.xlu1 %633, %v348_v33  }
 0x193   :  { %639 = vset.pattern.permute.xlu0 %v648_v50 }
 0x194   :  { %535 = vperm.xlu0 %639, %v347_v25  }
 0x195   :  { %634 = vset.pattern.permute.xlu1 %v646_v48 }
 0x196   :  { %475 = vperm.xlu1 %634, %v787_v17  }
 0x198   :  { %640 = vset.pattern.permute.xlu0 %v649_v51 }
 0x199   :  { %559 = vperm.xlu0 %640, %v787_v17  }
 0x19a   :  { %483 = vperm.xlu1 %634, %v348_v33  }
 0x19d   :  { %571 = vperm.xlu0 %640, %v349_v55  }
 0x19e   :  { %487 = vperm.xlu1 %634, %v349_v55  }
 0x1a2   :  { %637 = vset.pattern.permute.xlu1 %v647_v49 }
 0x1a3   :  { %507 = vperm.xlu1 %637, %v347_v25  }
 0x1a7   :  { %511 = vperm.xlu1 %637, %v348_v33  }
 0x1ab   :  { %638 = vset.pattern.permute.xlu1 %v648_v50 }
 0x1ac   :  { %531 = vperm.xlu1 %638, %v787_v17  }
 0x1b0   :  { %539 = vperm.xlu1 %638, %v348_v33  }
 0x1b4   :  { %543 = vperm.xlu1 %638, %v349_v55  }
 0x1b8   :  { %641 = vset.pattern.permute.xlu1 %v649_v51 }
 0x1b9   :  { %563 = vperm.xlu1 %641, %v347_v25  }
 0x1bd   :  { %567 = vperm.xlu1 %641, %v348_v33  }
 0x1de   :  { %v355_v5 = vpop.permute.xlu1 %354 }
 0x1df   :  { %v376_v56 = vmul.f32 %v375_v45, %v355_v5 }
 0x1e1   :  { %v386_v60 = vadd.f32 %v597_v54, %v376_v56 }
 0x1e9   :  { %v360_v47 = vpop.permute.xlu0 %359 }
 0x1ea   :  { %v377_v27 = vmul.f32 %v375_v45, %v360_v47 }
 0x1ec   :  { %v387_v32 = vadd.f32 %v597_v54, %v377_v27 }
 0x1ed   :  { %v811_v46 = vpop.permute.xlu1 %364 }
 0x1ee   :  { %v392_v57 = vpop.permute.xlu0 %391 }
 0x1ef   :  { %v410_v17 = vmul.f32 %v409_v58, %v392_v57  ;;  %v378_v57 = vmul.f32 %v375_v45, %v811_v46 }
 0x1f1   :  { %v370_v48 = vpop.permute.xlu1 %369  ;;  %v414_v21 = vadd.f32 %v410_v17, %v386_v60 }
 0x1f2   :  { %v404_v35 = vpop.permute.xlu0 %403  ;;  %v379_v8 = vmul.f32 %v375_v45, %v370_v48 }
 0x1f3   :  { %v413_v16 = vmul.f32 %v409_v58, %v404_v35 }
 0x1f4   :  { %v389_v9 = vadd.f32 %v597_v54, %v379_v8 }
 0x1f6   :  { %v396_v34 = vpop.permute.xlu1 %395  ;;  %v417_v20 = vadd.f32 %v413_v16, %v389_v9 }
 0x1f7   :  { %v424_v50 = vpop.permute.xlu0 %423  ;;  %v411_v12 = vmul.f32 %v409_v58, %v396_v34 }
 0x1f8   :  { %v439_v14 = vmul.f32 %v437_v62, %v424_v50 }
 0x1f9   :  { %v415_v61 = vadd.f32 %v411_v12, %v387_v32 }
 0x1fa   :  { %v813_v49 = vpop.permute.xlu1 %399 }
 0x1fb   :  { %v443_v34 = vadd.f32 %v439_v14, %v415_v61 }
 0x1fc   :  { %v448_v1 = vpop.permute.xlu0 %447 }
 0x1fd   :  { %v466_v18 = vmul.f32 %v465_v13, %v448_v1  ;;  %v412_v1 = vmul.f32 %v409_v58, %v813_v49 }
 0x1ff   :  { %v420_v36 = vpop.permute.xlu1 %419 }
 0x200   :  { %v460_v51 = vpop.permute.xlu0 %459  ;;  %v438_v3 = vmul.f32 %v437_v62, %v420_v36 }
 0x201   :  { %v469_v5 = vmul.f32 %v465_v13, %v460_v51 }
 0x202   :  { %v442_v31 = vadd.f32 %v438_v3, %v414_v21 }
 0x203   :  { %v815_v4 = vpop.permute.xlu1 %427 }
 0x204   :  { %v470_v26 = vadd.f32 %v466_v18, %v442_v31  ;;  %v440_v10 = vmul.f32 %v437_v62, %v815_v4 }
 0x205   :  { %v480_v43 = vpop.permute.xlu0 %479 }
 0x206   :  { %v495_v51 = vmul.f32 %v493_v63, %v480_v43 }
 0x207   :  { %v432_v2 = vpop.permute.xlu1 %431 }
 0x208   :  { %v441_v15 = vmul.f32 %v437_v62, %v432_v2 }
 0x20a   :  { %v504_v11 = vpop.permute.xlu0 %503  ;;  %v445_v24 = vadd.f32 %v441_v15, %v417_v20 }
 0x20b   :  { %v522_v25 = vmul.f32 %v521_v29, %v504_v11 }
 0x20c   :  { %v452_v40 = vpop.permute.xlu1 %451  ;;  %v473_v36 = vadd.f32 %v469_v5, %v445_v24 }
 0x20d   :  { %v467_v42 = vmul.f32 %v465_v13, %v452_v40  ;;  %v388_v40 = vadd.f32 %v597_v54, %v378_v57 }
 0x20e   :  { %v516_v6 = vpop.permute.xlu0 %515 }
 0x20f   :  { %v471_v2 = vadd.f32 %v467_v42, %v443_v34  ;;  %v525_v11 = vmul.f32 %v521_v29, %v516_v6  ;;  %v416_v46 = vadd.f32 %v412_v1, %v388_v40 }
 0x210   :  { %v817_v53 = vpop.permute.xlu1 %455 }
 0x211   :  { %v468_v45 = vmul.f32 %v465_v13, %v817_v53  ;;  %v499_v58 = vadd.f32 %v495_v51, %v471_v2  ;;  %v444_v60 = vadd.f32 %v440_v10, %v416_v46 }
 0x213   :  { %v536_v23 = vpop.permute.xlu0 %535  ;;  %v472_v3 = vadd.f32 %v468_v45, %v444_v60 }
 0x214   :  { %v551_v6 = vmul.f32 %v549_v37, %v536_v23 }
 0x215   :  { %v476_v44 = vpop.permute.xlu1 %475 }
 0x216   :  { %v494_v22 = vmul.f32 %v493_v63, %v476_v44 }
 0x218   :  { %v498_v59 = vadd.f32 %v494_v22, %v470_v26  ;;  %v560_v33 = vpop.permute.xlu0 %559 }
 0x219   :  { %v824_v52 = vpop.permute.xlu1 %483  ;;  %v578_v35 = vmul.f32 %v577_v38, %v560_v33 }
 0x21a   :  { %v526_v47 = vadd.f32 %v522_v25, %v498_v59  ;;  %v496_v54 = vmul.f32 %v493_v63, %v824_v52 }
 0x21c   :  { %v572_v49 = vpop.permute.xlu0 %571 }
 0x21d   :  { %v488_v19 = vpop.permute.xlu1 %487  ;;  %v581_v43 = vmul.f32 %v577_v38, %v572_v49 }
 0x21e   :  { %v497_v30 = vmul.f32 %v493_v63, %v488_v19 }
 0x220   :  { %v501_v7 = vadd.f32 %v497_v30, %v473_v36 }
 0x222   :  { %v508_v0 = vpop.permute.xlu1 %507  ;;  %v529_v17 = vadd.f32 %v525_v11, %v501_v7 }
 0x223   :  { %v523_v44 = vmul.f32 %v521_v29, %v508_v0  ;;  %v500_v0 = vadd.f32 %v496_v54, %v472_v3 }
 0x225   :  { %v527_v4 = vadd.f32 %v523_v44, %v499_v58 }
 0x226   :  { %v512_v28 = vpop.permute.xlu1 %511 }
 0x227   :  { %v524_v21 = vmul.f32 %v521_v29, %v512_v28  ;;  %v555_v9 = vadd.f32 %v551_v6, %v527_v4 }
 0x229   :  { %v528_v13 = vadd.f32 %v524_v21, %v500_v0 }
 0x22b   :  { %v532_v55 = vpop.permute.xlu1 %531 }
 0x22c   :  { %v550_v48 = vmul.f32 %v549_v37, %v532_v55 }
 0x22e   :  { %v554_v50 = vadd.f32 %v550_v48, %v526_v47 }
 0x22f   :  { %v540_v39 = vpop.permute.xlu1 %539 }
 0x230   :  { %v582_v41 = vadd.f32 %v578_v35, %v554_v50  ;;  %v552_v27 = vmul.f32 %v549_v37, %v540_v39 }
 0x232   :  { %587 = vst.msk [vmem:[%s869_s7] sm:$0xff] %vm586_vm0, %v582_v41  ;;  %v556_v63 = vadd.f32 %v552_v27, %v528_v13 }
 0x233   :  { %v544_v56 = vpop.permute.xlu1 %543 }
 0x234   :  { %v553_v19 = vmul.f32 %v549_v37, %v544_v56 }
 0x236   :  { %v557_v62 = vadd.f32 %v553_v19, %v529_v17 }
 0x238   :  { %v585_v8 = vadd.f32 %v581_v43, %v557_v62  ;;  %v564_v31 = vpop.permute.xlu1 %563 }
 0x239   :  { %v579_v53 = vmul.f32 %v577_v38, %v564_v31 }
 0x23a   :  { %590 = vst.msk [vmem:[%s869_s7 + $0x18] sm:$0xff] %vm586_vm0, %v585_v8 }
 0x23b   :  { %v583_v16 = vadd.f32 %v579_v53, %v555_v9 }
 0x23c   :  { %v568_v52 = vpop.permute.xlu1 %567 }
 0x23d   :  { %588 = vst.msk [vmem:[%s869_s7 + $0x8] sm:$0xff] %vm586_vm0, %v583_v16  ;;  %v580_v18 = vmul.f32 %v577_v38, %v568_v52 }
 0x23f   :  { %v584_v22 = vadd.f32 %v580_v18, %v556_v63 }
 0x241   :  { %589 = vst.msk [vmem:[%s869_s7 + $0x10] sm:$0xff] %vm586_vm0, %v584_v22 }

</bundles_post_ra>
